<compile_context>
chip_gen: v5e
topology: v5e:2x2
jax: 0.10.0
libtpu: 0.0.40
codegen_flags: <defaults>
</compile_context>

<pallas_src>
import jax
import jax.numpy as jnp
from jax.experimental import pallas as pl
from jax.experimental.pallas import tpu as pltpu

LANES = 1024       # lane-dense slab width (multiple of 128)
MAX_TILE_ROWS = 512  # (512, 1024) f32 tile = 2 MiB per block


def _round_up(x, m):
    return ((x + m - 1) // m) * m


def _linreg_kernel(w_ref, b_ref, x_ref, o_ref):
    # w_ref / b_ref: (1,) f32 scalars in SMEM (scalar prefetch).
    # x_ref / o_ref: (TM, LANES) f32 VMEM tiles.
    # y = x * w + b : single fused multiply-add, one unmasked store per vreg.
    o_ref[...] = x_ref[...] * w_ref[0] + b_ref[0]


def linear_regression_forward(x, weight, bias):
    """x: (N, 1) f32, weight: (1, 1) f32, bias: (1,) f32 -> (N,) f32."""
    n = x.shape[0]
    flat = x.reshape(-1).astype(jnp.float32)          # (N,)

    # Lane-dense repack: (N,) -> (rows_padded, LANES), padded to whole tiles.
    rows = max(pl.cdiv(n, LANES), 1)
    tm = MAX_TILE_ROWS if rows >= MAX_TILE_ROWS else _round_up(rows, 8)
    rows_padded = _round_up(rows, tm)
    total = rows_padded * LANES
    flat = jnp.pad(flat, (0, total - n))
    slab = flat.reshape(rows_padded, LANES)

    w_s = weight.reshape(1).astype(jnp.float32)        # (1,) scalar prefetch
    b_s = bias.reshape(1).astype(jnp.float32)          # (1,) scalar prefetch

    grid = (rows_padded // tm,)

    y_slab = pl.pallas_call(
        _linreg_kernel,
        out_shape=jax.ShapeDtypeStruct((rows_padded, LANES), jnp.float32),
        grid_spec=pltpu.PrefetchScalarGridSpec(
            num_scalar_prefetch=2,
            grid=grid,
            in_specs=[
                pl.BlockSpec((tm, LANES), lambda i, w, b: (i, 0)),
            ],
            out_specs=pl.BlockSpec((tm, LANES), lambda i, w, b: (i, 0)),
        ),
        compiler_params=pltpu.CompilerParams(
            dimension_semantics=("parallel",),   # v7x: shard row tiles across 2 TCs
        ),
    )(w_s, b_s, slab)

    # squeeze(1) equivalent: flatten the lane-dense slab (metadata reshape) and
    # drop the padded tail.
    return y_slab.reshape(-1)[:n]


if __name__ == "__main__":
    key = jax.random.PRNGKey(0)
    kx, kw, kb, kx2 = jax.random.split(key, 4)

    # Small deterministic example: batch of 8 samples, in_features = 1
    # (matches the PyTorch module's x.reshape(-1, 1) input layout).
    n = 8
    x = jax.random.normal(kx, (n, 1), dtype=jnp.float32)

    # nn.Linear(1, 1) params: weight (out, in) = (1, 1), bias (out,) = (1,)
    bound = 1.0  # U(-1/sqrt(in_features), 1/sqrt(in_features)) = U(-1, 1)
    weight = jax.random.uniform(kw, (1, 1), jnp.float32, -bound, bound)
    bias = jax.random.uniform(kb, (1,), jnp.float32, -bound, bound)

    y = linear_regression_forward(x, weight, bias)
    y = jax.block_until_ready(y)

    # Reference: (x @ W^T + b).squeeze(1)
    y_ref = (x @ weight.T + bias)[:, 0]
    assert y.shape == (n,)
    assert jnp.allclose(y, y_ref, atol=1e-6), (y, y_ref)

    # Second check: non-multiple-of-tile N exercises the pad + slice-back path.
    n2 = 2500
    x2 = jax.random.normal(kx2, (n2, 1), dtype=jnp.float32)
    y2 = jax.block_until_ready(linear_regression_forward(x2, weight, bias))
    y2_ref = (x2 @ weight.T + bias)[:, 0]
    assert y2.shape == (n2,)
    assert jnp.allclose(y2, y2_ref, atol=1e-6)

    print("KERNEL_OK")
</pallas_src>

<mosaic_0001>
module attributes {stable_mosaic.version = 11 : i64} {
  func.func @_linreg_kernel(%arg0: i32, %arg1: memref<1xf32, #tpu.memory_space<smem>>, %arg2: memref<1xf32, #tpu.memory_space<smem>>, %arg3: memref<8x1024xf32, #tpu.memory_space<vmem>>, %arg4: memref<8x1024xf32, #tpu.memory_space<vmem>>) attributes {dimension_semantics = [#tpu.dimension_semantics<parallel>], iteration_bounds = array<i64: 1>, scalar_prefetch = 2 : i64, scratch_operands = 0 : i64, tpu.core_type = #tpu.core_type<tc>, window_params = [{transform_indices = @transform_0, window_bounds = array<i64: 8, 1024>}, {transform_indices = @transform_1, window_bounds = array<i64: 8, 1024>}]} {
    %c0 = arith.constant 0 : index
    %c0_0 = arith.constant 0 : index
    %0 = vector.load %arg3[%c0, %c0_0] : memref<8x1024xf32, #tpu.memory_space<vmem>>, vector<8x1024xf32>
    %c0_1 = arith.constant 0 : index
    %1 = memref.load %arg1[%c0_1] : memref<1xf32, #tpu.memory_space<smem>>
    %2 = vector.broadcast %1 : f32 to vector<8x1024xf32>
    %3 = arith.mulf %0, %2 : vector<8x1024xf32>
    %c0_2 = arith.constant 0 : index
    %4 = memref.load %arg2[%c0_2] : memref<1xf32, #tpu.memory_space<smem>>
    %5 = vector.broadcast %4 : f32 to vector<8x1024xf32>
    %6 = arith.addf %3, %5 : vector<8x1024xf32>
    %c0_3 = arith.constant 0 : index
    %c0_4 = arith.constant 0 : index
    %7 = vector.load %arg4[%c0_3, %c0_4] : memref<8x1024xf32, #tpu.memory_space<vmem>>, vector<8x1024xf32>
    tpu.vector_store %arg4[%c0_3, %c0_4], %6 {strides = array<i32>} : memref<8x1024xf32, #tpu.memory_space<vmem>>, vector<8x1024xf32>,
    return
  }
  func.func @transform_0(%arg0: i32, %arg1: memref<1xf32, #tpu.memory_space<smem>>, %arg2: memref<1xf32, #tpu.memory_space<smem>>) -> (i32, i32) {
    %c0_i32 = arith.constant 0 : i32
    %c0_i32_0 = arith.constant 0 : i32
    return %arg0, %c0_i32 : i32, i32
  }
  func.func @transform_1(%arg0: i32, %arg1: memref<1xf32, #tpu.memory_space<smem>>, %arg2: memref<1xf32, #tpu.memory_space<smem>>) -> (i32, i32) {
    %c0_i32 = arith.constant 0 : i32
    %c0_i32_0 = arith.constant 0 : i32
    return %arg0, %c0_i32 : i32, i32
  }
}

</mosaic_0001>

<bundles_post_ra>
// kernel: tpu_custom_call.1
= control target key start
LH: loop header
LB: loop body
LE: loop exit
PB: predicated region body
PF: predicated region fallthrough
CT: control target
= control target key end

     0   :  { %10 = vsyncpa [#allocation6], 0  ;;  %s168_s0 = inlined_call_operand.<no memory space> [shape: f32[1], index: 0, kind: input, shape index: {}]   ;;  %s169_s1 = inlined_call_operand.<no memory space> [shape: f32[1], index: 1, kind: input, shape index: {}]   ;;  %s170_s2 = inlined_call_operand.hbm [shape: f32[8,1024], index: 2, kind: input, shape index: {}]   ;;  %s171_s3 = inlined_call_operand.hbm [shape: f32[8,1024], index: 3, kind: output, shape index: {}]  }
   0x1   :  { %11 = vsyncpa [#allocation7], 0  ;;  %s17_s14 = sshll.u32 %s170_s2, 4  ;;  %s134_s15 = smov [#allocation5]   ;;  %s18_s14 = int_to_ptr.hbm [resolvable:$true] %s17_s14 }
   0x2   :  { %s19_s16 = sshll.u32 %s134_s15, 4  ;;  %s20_s16 = int_to_ptr.vmem [resolvable:$true] %s19_s16 }
   0x3   :  { %22 = dma.hbm_to_vmem [thread:$0]  %s18_s14, 1024, %s20_s16, [#allocation6]  }
   0x4   :  { %130 = dma.done.wait [#allocation6], 1024  }
   0x5   :  { %131 = vsyncadd [#allocation6], 4294966272  ;;  %v36_v0 = vstv %s168_s0  ;;  %v27_v1 = vld [vmem:[#allocation5] sm:$0xff]  ;;  %v46_v2 = vstv %s169_s1  ;;  %v28_v3 = vld [vmem:[#allocation5 + $0x8] sm:$0xff]  ;;  %s135_s0 = smov [#allocation8]   ;;  %s70_s22 = sshll.u32 %s171_s3, 4  ;;  %s71_s22 = int_to_ptr.hbm [resolvable:$true] %s70_s22 }
   0x6   :  { %v29_v4 = vld [vmem:[#allocation5 + $0x10] sm:$0xff]  ;;  %v37_v5 = vmul.f32 %v36_v0, %v27_v1  ;;  %v38_v6 = vmul.f32 %v36_v0, %v28_v3  ;;  %v30_v8 = vld [vmem:[#allocation5 + $0x18] sm:$0xff]  ;;  %v31_v9 = vld [vmem:[#allocation5 + $0x20] sm:$0xff]  ;;  %s68_s1 = sshll.u32 %s135_s0, 4  ;;  %s69_s1 = int_to_ptr.vmem [resolvable:$true] %s68_s1 }
   0x7   :  { %v39_v7 = vmul.f32 %v36_v0, %v29_v4  ;;  %v32_v10 = vld [vmem:[#allocation5 + $0x28] sm:$0xff]  ;;  %v40_v11 = vmul.f32 %v36_v0, %v30_v8  ;;  %v41_v12 = vmul.f32 %v36_v0, %v31_v9  ;;  %v33_v14 = vld [vmem:[#allocation5 + $0x30] sm:$0xff]  ;;  %v34_v15 = vld [vmem:[#allocation5 + $0x38] sm:$0xff] }
   0x8   :  { %v42_v13 = vmul.f32 %v36_v0, %v32_v10  ;;  %v47_v16 = vadd.f32 %v46_v2, %v37_v5  ;;  %v48_v17 = vadd.f32 %v46_v2, %v38_v6  ;;  %v43_v19 = vmul.f32 %v36_v0, %v33_v14 }
   0x9   :  { %v49_v18 = vadd.f32 %v46_v2, %v39_v7  ;;  %v50_v20 = vadd.f32 %v46_v2, %v40_v11  ;;  %v44_v21 = vmul.f32 %v36_v0, %v34_v15  ;;  %v51_v22 = vadd.f32 %v46_v2, %v41_v12 }
   0xa   :  { %55 = vst [vmem:[#allocation8] sm:$0xff] %v47_v16  ;;  %v52_v23 = vadd.f32 %v46_v2, %v42_v13  ;;  %v53_v24 = vadd.f32 %v46_v2, %v43_v19 }
   0xb   :  { %56 = vst [vmem:[#allocation8 + $0x8] sm:$0xff] %v48_v17  ;;  %v54_v25 = vadd.f32 %v46_v2, %v44_v21 }
   0xc   :  { %57 = vst [vmem:[#allocation8 + $0x10] sm:$0xff] %v49_v18 }
   0xd   :  { %58 = vst [vmem:[#allocation8 + $0x18] sm:$0xff] %v50_v20 }
   0xe   :  { %59 = vst [vmem:[#allocation8 + $0x20] sm:$0xff] %v51_v22 }
   0xf   :  { %60 = vst [vmem:[#allocation8 + $0x28] sm:$0xff] %v52_v23 }
  0x10   :  { %61 = vst [vmem:[#allocation8 + $0x30] sm:$0xff] %v53_v24 }
  0x11   :  { %62 = vst [vmem:[#allocation8 + $0x38] sm:$0xff] %v54_v25 }
  0x12   :  { %73 = dma.vmem_to_hbm [thread:$0]  %s69_s1, 1024, %s71_s22, [#allocation7]  }
  0x13   :  { %132 = dma.done.wait [#allocation7], 1024  }
  0x14   :  { %133 = vsyncadd [#allocation7], 4294966272 }
  0x15   :  { %78 = vsyncpa [#allocation6], 1 }
  0x16   :  { %79 = vsyncpa [#allocation7], 1 }

</bundles_post_ra>
